<compile_context>
chip_gen: v7x
topology: tpu7x:2x2x1
jax: 0.10.0
libtpu: 0.0.40
codegen_flags: <defaults>
</compile_context>

<pallas_src>
import jax
import jax.numpy as jnp
from jax.experimental import pallas as pl
from jax.experimental.pallas import tpu as pltpu

# ----------------------------- problem sizes --------------------------------
N_PROT = 16
N_DRUG = 8
N_ALL = N_PROT + N_DRUG          # 24 merged nodes
D_PROT = 16                      # raw Prot feature dim (GraphConv(-1, H) lazy)
D_DRUG = 16                      # raw Drug feature dim
HIDDEN = 16                      # hidden_channels
NUM_LAYERS = 5                   # num_layers (1 before merging + 4 after)
LANE = 128                       # TPU lane width

EDGE_TYPES_PROT_DST = [('Prot', 'interact', 'Prot'),
                       ('Prot', 'rev_interact', 'Prot'),
                       ('Drug', 'bind', 'Prot')]
EDGE_TYPES_DRUG_DST = [('Drug', 'interact', 'Drug'),
                       ('Drug', 'rev_interact', 'Drug'),
                       ('Prot', 'rev_bind', 'Drug')]
EDGE_TYPES = EDGE_TYPES_PROT_DST + EDGE_TYPES_DRUG_DST
FEAT_DIM = {'Prot': D_PROT, 'Drug': D_DRUG}

# --------------------------- packed slab layout ------------------------------
# Input slab rows (all row offsets are multiples of 8; every block is 128 lanes
# wide with unused lanes zero-filled):
R_LHS = 0                              # (24,128)  [A_all | X_root | 0]
R_XBLK = R_LHS + N_ALL                 # 24: (128,128) [[X_blk, 0],[0, I32],[0]]
R_WRC = R_XBLK + LANE                  # 152: (128,128) [W_rel ; W_root] in cols 0:16
R_ADJ = R_WRC + LANE                   # 280: (24,128)  merged adjacency in cols 0:24
R_WSTK = R_ADJ + N_ALL                 # 304: (80,128)  W_i in rows 16i:16i+16, cols 0:16
SLAB_ROWS = R_WSTK + NUM_LAYERS * HIDDEN     # 384
OUT_ROWS = (NUM_LAYERS + 2) * N_ALL          # 168 = 6 z-blocks + A_pred block

_COST_FLOPS = int(2 * (LANE * LANE * LANE + N_ALL * LANE * LANE
                       + NUM_LAYERS * (N_ALL * N_ALL * LANE + N_ALL * HIDDEN * LANE)
                       + N_ALL * HIDDEN * LANE))
_COST_TRANS = int(N_ALL * LANE + N_ALL)
_COST_BYTES = int(4 * (SLAB_ROWS * LANE + OUT_ROWS * LANE))


# ============================ fused Pallas kernel ============================

def _fused_model_kernel(slab_ref, out_ref, zbig_ref):
    """Whole Model.forward in one kernel (no grid, whole-array VMEM refs)."""
    f32 = jnp.float32

    # ----- static, full-lane views of the packed input slab ------------------
    lhs = slab_ref[pl.ds(R_LHS, N_ALL), :]        # (24,128) [A_all | X_root | 0]
    xblk = slab_ref[pl.ds(R_XBLK, LANE), :]       # (128,128)
    wrc = slab_ref[pl.ds(R_WRC, LANE), :]         # (128,128)
    adjw = slab_ref[pl.ds(R_ADJ, N_ALL), :]       # (24,128) adj in cols 0:24

    # ----- HeteroConv(aggr='sum'), reassociated to two dependent matmuls -----
    #   rhs = [X_blk ; I ; 0] @ [W_rel ; W_root]   (only cols 0:16 nonzero)
    #   z0  = [A_all | X_root | 0] @ rhs           (24,128), lanes 16: are zero
    rhs = jnp.dot(xblk, wrc, preferred_element_type=f32)
    z = jnp.dot(lhs, rhs, preferred_element_type=f32)
    out_ref[pl.ds(0, N_ALL), :] = z               # z0, lane-dense store

    # ----- degree normalisation: D^-1 @ A (row scaling) -----------------------
    deg = jnp.sum(adjw, axis=1, keepdims=True)    # self-loops guarantee >= 1
    dinv = pl.reciprocal(deg, approx=True)        # EUP vrcp seed
    dinv = dinv * (2.0 - deg * dinv)              # one Newton step -> f32 accurate
    adj_n = adjw[:, 0:N_ALL] * dinv               # (24,24)

    # ----- NUM_LAYERS propagate / linear / relu stack -------------------------
    # Layer 0 (merging layer) and the last layer have no ReLU; layers 1..3 do.
    for i in range(NUM_LAYERS):
        w = slab_ref[pl.ds(R_WSTK + i * HIDDEN, HIDDEN), :]   # (16,128), W_i in cols 0:16
        h = jnp.dot(adj_n, z, preferred_element_type=f32)     # (24,128)
        z = jnp.dot(h[:, 0:HIDDEN], w, preferred_element_type=f32)  # (24,128)
        if 0 < i < NUM_LAYERS - 1:
            z = jnp.maximum(z, 0.0)
        out_ref[pl.ds((i + 1) * N_ALL, N_ALL), :] = z         # lane-dense store

    # ----- EdgeDecoder: sigmoid(z z^T), produced 128-lanes wide ---------------
    z16 = z[:, 0:HIDDEN]
    zbig_ref[...] = jnp.zeros((LANE, HIDDEN), f32)
    zbig_ref[pl.ds(0, N_ALL), :] = z16
    logits = jax.lax.dot_general(z16, zbig_ref[...],
                                 dimension_numbers=(((1,), (1,)), ((), ())),
                                 preferred_element_type=f32)  # (24,128)
    lane = jax.lax.broadcasted_iota(jnp.int32, (N_ALL, LANE), 1)
    out_ref[pl.ds((NUM_LAYERS + 1) * N_ALL, N_ALL), :] = jnp.where(
        lane < N_ALL, jax.nn.sigmoid(logits), 0.0)


# ========================= graph-static precompute ===========================
# Scatter-free dense graph operands (one-hot matmuls + pad/concat only).
# For a static graph this runs ONCE, off the per-call path.

def _edge_counts(edge_index, n_dst, n_src):
    """Message-aggregation matrix A[dst, src] = #edges (GraphConv 'add')."""
    dst = (edge_index[1][None, :] == jnp.arange(n_dst)[:, None]).astype(jnp.float32)
    src = (edge_index[0][None, :] == jnp.arange(n_src)[:, None]).astype(jnp.float32)
    return dst @ src.T


def _dense01(edge_index, n_rows, n_cols):
    """to_dense_adj(edge_index).clamp(max=1): A[edge[0], edge[1]] in {0,1}."""
    r = (edge_index[0][None, :] == jnp.arange(n_rows)[:, None]).astype(jnp.float32)
    c = (edge_index[1][None, :] == jnp.arange(n_cols)[:, None]).astype(jnp.float32)
    return jnp.minimum(r @ c.T, 1.0)


def find_adj(edge_index_dict, n_prot, n_drug):
    """JAX re-implementation of the module's find_Adj (dense merged adjacency,
    self-loops on the PPI/DDI blocks, everything clamped to 1)."""
    f32 = jnp.float32
    ppi = _dense01(edge_index_dict[('Prot', 'interact', 'Prot')], n_prot, n_prot)
    ppit = _dense01(edge_index_dict[('Prot', 'rev_interact', 'Prot')], n_prot, n_prot)
    a_ppi = jnp.minimum(ppi + ppit + jnp.eye(n_prot, dtype=f32), 1.0)
    ddi = _dense01(edge_index_dict[('Drug', 'interact', 'Drug')], n_drug, n_drug)
    ddit = _dense01(edge_index_dict[('Drug', 'rev_interact', 'Drug')], n_drug, n_drug)
    a_ddi = jnp.minimum(ddi + ddit + jnp.eye(n_drug, dtype=f32), 1.0)
    blk_dp = _dense01(edge_index_dict[('Drug', 'bind', 'Prot')], n_drug, n_prot)
    blk_pd = _dense01(edge_index_dict[('Prot', 'rev_bind', 'Drug')], n_prot, n_drug)
    top = jnp.concatenate([a_ppi, blk_pd], axis=1)
    bot = jnp.concatenate([blk_dp, a_ddi], axis=1)
    return jnp.concatenate([top, bot], axis=0)        # (24,24), [Prot ; Drug] order


def precompute_graph(edge_index_dict, n_prot, n_drug):
    """Graph-only operands (compute once per static graph)."""
    nn = {'Prot': n_prot, 'Drug': n_drug}
    msgs_p = [_edge_counts(edge_index_dict[e], n_prot, nn[e[0]])
              for e in EDGE_TYPES_PROT_DST]
    msgs_d = [_edge_counts(edge_index_dict[e], n_drug, nn[e[0]])
              for e in EDGE_TYPES_DRUG_DST]
    a_p = jnp.concatenate(msgs_p, axis=1)              # (16, 40)
    a_d = jnp.concatenate(msgs_d, axis=1)              # (8, 32)
    kp, kd = a_p.shape[1], a_d.shape[1]
    a_all = jnp.concatenate([jnp.pad(a_p, ((0, 0), (0, kd))),
                             jnp.pad(a_d, ((0, 0), (kp, 0)))], axis=0)   # (24, 72)
    adj = find_adj(edge_index_dict, n_prot, n_drug)
    return {'a_all': a_all, 'adj': adj}


def pack_conv_weights(conv_params):
    """Param-only packing: stacked relation weights + summed root weights."""
    wrel = jnp.concatenate([conv_params[e]['rel'] for e in EDGE_TYPES], axis=0)  # (96,16)
    wroot_p = sum(conv_params[e]['root'] for e in EDGE_TYPES_PROT_DST)           # (16,16)
    wroot_d = sum(conv_params[e]['root'] for e in EDGE_TYPES_DRUG_DST)           # (16,16)
    return jnp.concatenate([wrel, wroot_p, wroot_d], axis=0)                     # (128,16)


# ======================= per-call packing + fused call =======================

def _block_diag(mats):
    cols = sum(m.shape[1] for m in mats)
    rows, c = [], 0
    for m in mats:
        rows.append(jnp.pad(m, ((0, 0), (c, cols - c - m.shape[1]))))
        c += m.shape[1]
    return jnp.concatenate(rows, axis=0)


def _pack_slab(a_all, adj, x_prot, x_drug, wrel_cat, w_stack):
    """Build the single lane-dense (SLAB_ROWS, 128) input slab (pad/concat only)."""
    f32 = jnp.float32

    def lanes(m):                      # pad last dim to 128 lanes with zeros
        return jnp.pad(m, ((0, 0), (0, LANE - m.shape[1])))

    xroot = _block_diag([x_prot, x_drug])                                   # (24, 32)
    lhs = lanes(jnp.concatenate([a_all, xroot], axis=1))                    # (24,128)

    xblk = _block_diag([x_prot, x_prot, x_drug, x_drug, x_drug, x_prot])    # (72, 96)
    n_r, n_c = xblk.shape
    id_sz = D_PROT + D_DRUG                                                 # 32
    xblk_ext = (jnp.pad(xblk, ((0, LANE - n_r), (0, LANE - n_c)))
                + jnp.pad(jnp.eye(id_sz, dtype=f32),
                          ((n_r, LANE - n_r - id_sz), (n_c, 0))))           # (128,128)

    wrc = lanes(wrel_cat)                                                   # (128,128)
    adj_blk = lanes(adj)                                                    # (24,128)
    wstk = lanes(w_stack.reshape(NUM_LAYERS * HIDDEN, HIDDEN))              # (80,128)

    return jnp.concatenate([lhs, xblk_ext, wrc, adj_blk, wstk], axis=0)     # (384,128)


@jax.jit
def _forward_core(a_all, adj, x_prot, x_drug, wrel_cat, w_stack):
    """Packing + single fused pallas_call + unpacking, compiled as one program."""
    slab = _pack_slab(a_all, adj, x_prot, x_drug, wrel_cat, w_stack)
    out = pl.pallas_call(
        _fused_model_kernel,
        out_shape=jax.ShapeDtypeStruct((OUT_ROWS, LANE), jnp.float32),
        in_specs=[pl.BlockSpec(memory_space=pltpu.MemorySpace.VMEM)],
        out_specs=pl.BlockSpec(memory_space=pltpu.MemorySpace.VMEM),
        scratch_shapes=[pltpu.VMEM((LANE, HIDDEN), jnp.float32)],
        cost_estimate=pl.CostEstimate(flops=_COST_FLOPS,
                                      transcendentals=_COST_TRANS,
                                      bytes_accessed=_COST_BYTES),
    )(slab)
    zs = out[: (NUM_LAYERS + 1) * N_ALL].reshape(
        NUM_LAYERS + 1, N_ALL, LANE)[:, :, :HIDDEN]
    a_pred = out[(NUM_LAYERS + 1) * N_ALL:, :N_ALL]
    return a_pred, zs


def model_forward(params, x_dict, edge_index_dict, edge_label_index, graph=None):
    """Model.forward: returns (A_adj_predicted, intermediate_representations)."""
    del edge_label_index                       # EdgeDecoder ignores it (as in PyTorch)
    x_prot, x_drug = x_dict['Prot'], x_dict['Drug']
    if graph is None:                          # graph-static: precompute once & reuse
        graph = precompute_graph(edge_index_dict, x_prot.shape[0], x_drug.shape[0])
    wrel_cat = pack_conv_weights(params['conv'])           # param-static, cacheable
    w_stack = jnp.stack(params['weights'], axis=0)

    a_pred, zs = _forward_core(graph['a_all'], graph['adj'],
                               x_prot, x_drug, wrel_cat, w_stack)

    # intermediate_representations = [z0, W0, z1, W1, ..., W4, z5]
    intermediates = [zs[0]]
    for i in range(NUM_LAYERS):
        intermediates.append(params['weights'][i])
        intermediates.append(zs[i + 1])
    return a_pred, intermediates


# --------------------------- pure-JAX reference ------------------------------

def reference_forward(params, x_dict, edge_index_dict):
    x_prot, x_drug = x_dict['Prot'], x_dict['Drug']
    n_prot, n_drug = x_prot.shape[0], x_drug.shape[0]
    feat = {'Prot': x_prot, 'Drug': x_drug}
    nn = {'Prot': n_prot, 'Drug': n_drug}
    cw = params['conv']

    def conv_out(dst, edge_types):
        x_dst = feat[dst]
        out = jnp.zeros((x_dst.shape[0], HIDDEN), jnp.float32)
        for e in edge_types:
            a = _edge_counts(edge_index_dict[e], x_dst.shape[0], nn[e[0]])
            out = out + (a @ feat[e[0]]) @ cw[e]['rel'] + x_dst @ cw[e]['root']
        return out

    z = jnp.concatenate([conv_out('Prot', EDGE_TYPES_PROT_DST),
                         conv_out('Drug', EDGE_TYPES_DRUG_DST)], axis=0)
    adj = find_adj(edge_index_dict, n_prot, n_drug)
    adj_n = adj / jnp.sum(adj, axis=1, keepdims=True)
    zs = [z]
    for i in range(NUM_LAYERS):
        z = (adj_n @ z) @ params['weights'][i]
        if 0 < i < NUM_LAYERS - 1:
            z = jnp.maximum(z, 0.0)
        zs.append(z)
    return jax.nn.sigmoid(z @ z.T), zs


# ================================== main =====================================

def _xavier_uniform(key, shape):
    bound = (6.0 / (shape[0] + shape[1])) ** 0.5
    return jax.random.uniform(key, shape, jnp.float32, -bound, bound)


if __name__ == "__main__":
    key = jax.random.PRNGKey(0)

    # ---- deterministic synthetic inputs (x_dict, edge_index_dict, labels) ----
    key, kp, kd = jax.random.split(key, 3)
    x_dict = {'Prot': jax.random.normal(kp, (N_PROT, D_PROT), jnp.float32),
              'Drug': jax.random.normal(kd, (N_DRUG, D_DRUG), jnp.float32)}

    prot_ids = jnp.arange(N_PROT, dtype=jnp.int32)
    drug_ids = jnp.arange(N_DRUG, dtype=jnp.int32)
    ppi = jnp.stack([prot_ids, (prot_ids + 1) % N_PROT])
    ddi = jnp.stack([drug_ids, (drug_ids + 1) % N_DRUG])
    bind = jnp.stack([drug_ids, (drug_ids * 2) % N_PROT])          # Drug -> Prot
    edge_index_dict = {
        ('Prot', 'interact', 'Prot'): ppi,
        ('Prot', 'rev_interact', 'Prot'): ppi[::-1],
        ('Drug', 'interact', 'Drug'): ddi,
        ('Drug', 'rev_interact', 'Drug'): ddi[::-1],
        ('Drug', 'bind', 'Prot'): bind,
        ('Prot', 'rev_bind', 'Drug'): bind[::-1],
    }
    edge_label_index = jnp.stack([drug_ids, (drug_ids * 3) % N_PROT])  # unused by forward

    # ---- deterministic parameters (xavier_uniform, as in reset_parameters) ---
    conv_params = {}
    for et in EDGE_TYPES:
        src, _, dst = et
        key, k1, k2 = jax.random.split(key, 3)
        conv_params[et] = {'rel': _xavier_uniform(k1, (FEAT_DIM[src], HIDDEN)),
                           'root': _xavier_uniform(k2, (FEAT_DIM[dst], HIDDEN))}
    weights = []
    for _ in range(NUM_LAYERS):
        key, k = jax.random.split(key)
        weights.append(_xavier_uniform(k, (HIDDEN, HIDDEN)))
    params = {'conv': conv_params, 'weights': weights}

    # ---- graph-static precompute (once), then fused forward -------------------
    graph = precompute_graph(edge_index_dict, N_PROT, N_DRUG)
    a_pred, intermediates = model_forward(params, x_dict, edge_index_dict,
                                          edge_label_index, graph=graph)
    a_pred = jax.block_until_ready(a_pred)
    z_update = jax.block_until_ready(intermediates[-1])

    # ---- check against pure-JAX reference ------------------------------------
    a_ref, zs_expected = reference_forward(params, x_dict, edge_index_dict)
    assert a_pred.shape == (N_ALL, N_ALL)
    assert z_update.shape == (N_ALL, HIDDEN)
    for i in range(NUM_LAYERS + 1):
        assert bool(jnp.allclose(intermediates[2 * i], zs_expected[i],
                                 atol=2e-3, rtol=2e-3)), f"encoder mismatch at z{i}"
    assert bool(jnp.allclose(a_pred, a_ref, atol=2e-3, rtol=2e-3)), "decoder mismatch"

    print("KERNEL_OK")
</pallas_src>

<mosaic_0001>
module attributes {stable_mosaic.version = 11 : i64} {
  func.func @_fused_model_kernel(%arg0: memref<384x128xf32, #tpu.memory_space<vmem>>, %arg1: memref<168x128xf32, #tpu.memory_space<vmem>>, %arg2: memref<128x16xf32, #tpu.memory_space<vmem>>) attributes {dimension_semantics = [], scalar_prefetch = 0 : i64, scratch_operands = 1 : i64, tpu.core_type = #tpu.core_type<tc>} {
    %c0 = arith.constant 0 : index
    %c0_0 = arith.constant 0 : index
    %0 = vector.load %arg0[%c0, %c0_0] : memref<384x128xf32, #tpu.memory_space<vmem>>, vector<24x128xf32>
    %c24 = arith.constant 24 : index
    %c0_1 = arith.constant 0 : index
    %1 = vector.load %arg0[%c24, %c0_1] : memref<384x128xf32, #tpu.memory_space<vmem>>, vector<128x128xf32>
    %c152 = arith.constant 152 : index
    %c0_2 = arith.constant 0 : index
    %2 = vector.load %arg0[%c152, %c0_2] : memref<384x128xf32, #tpu.memory_space<vmem>>, vector<128x128xf32>
    %c280 = arith.constant 280 : index
    %c0_3 = arith.constant 0 : index
    %3 = vector.load %arg0[%c280, %c0_3] : memref<384x128xf32, #tpu.memory_space<vmem>>, vector<24x128xf32>
    %cst = arith.constant dense<0.000000e+00> : vector<128x128xf32>
    %4 = tpu.matmul %1, %2, %cst {dimension_numbers = #tpu.dot_dimension_numbers<[1], [0], [0], [1], [0, 0, 1, 1], [], []>} : vector<128x128xf32>, vector<128x128xf32>, vector<128x128xf32> -> vector<128x128xf32>
    %cst_4 = arith.constant dense<0.000000e+00> : vector<24x128xf32>
    %5 = tpu.matmul %0, %4, %cst_4 {dimension_numbers = #tpu.dot_dimension_numbers<[1], [0], [0], [1], [0, 0, 1, 1], [], []>} : vector<24x128xf32>, vector<128x128xf32>, vector<24x128xf32> -> vector<24x128xf32>
    %c0_5 = arith.constant 0 : index
    %c0_6 = arith.constant 0 : index
    %6 = vector.load %arg1[%c0_5, %c0_6] : memref<168x128xf32, #tpu.memory_space<vmem>>, vector<24x128xf32>
    tpu.vector_store %arg1[%c0_5, %c0_6], %5 {strides = array<i32>} : memref<168x128xf32, #tpu.memory_space<vmem>>, vector<24x128xf32>,
    %cst_7 = arith.constant dense<0.000000e+00> : vector<24xf32>
    %7 = vector.multi_reduction <add>, %3, %cst_7 [1] : vector<24x128xf32> to vector<24xf32>
    %8 = vector.shape_cast %7 : vector<24xf32> to vector<24x1xf32>
    %9 = tpu.reciprocal %8 {approx = true} : vector<24x1xf32> -> vector<24x1xf32>
    %10 = arith.mulf %8, %9 : vector<24x1xf32>
    %cst_8 = arith.constant 2.000000e+00 : f32
    %11 = vector.broadcast %cst_8 : f32 to vector<24x1xf32>
    %12 = arith.subf %11, %10 : vector<24x1xf32>
    %13 = arith.mulf %9, %12 : vector<24x1xf32>
    %14 = vector.extract_strided_slice %3 {offsets = [0, 0], sizes = [24, 24], strides = [1, 1]} : vector<24x128xf32> to vector<24x24xf32>
    %15 = vector.broadcast %13 : vector<24x1xf32> to vector<24x24xf32>
    %16 = arith.mulf %14, %15 : vector<24x24xf32>
    %c304 = arith.constant 304 : index
    %c0_9 = arith.constant 0 : index
    %17 = vector.load %arg0[%c304, %c0_9] : memref<384x128xf32, #tpu.memory_space<vmem>>, vector<16x128xf32>
    %cst_10 = arith.constant dense<0.000000e+00> : vector<24x128xf32>
    %18 = tpu.matmul %16, %5, %cst_10 {dimension_numbers = #tpu.dot_dimension_numbers<[1], [0], [0], [1], [0, 0, 1, 1], [], []>} : vector<24x24xf32>, vector<24x128xf32>, vector<24x128xf32> -> vector<24x128xf32>
    %19 = vector.extract_strided_slice %18 {offsets = [0, 0], sizes = [24, 16], strides = [1, 1]} : vector<24x128xf32> to vector<24x16xf32>
    %cst_11 = arith.constant dense<0.000000e+00> : vector<24x128xf32>
    %20 = tpu.matmul %19, %17, %cst_11 {dimension_numbers = #tpu.dot_dimension_numbers<[1], [0], [0], [1], [0, 0, 1, 1], [], []>} : vector<24x16xf32>, vector<16x128xf32>, vector<24x128xf32> -> vector<24x128xf32>
    %c24_12 = arith.constant 24 : index
    %c0_13 = arith.constant 0 : index
    %21 = vector.load %arg1[%c24_12, %c0_13] : memref<168x128xf32, #tpu.memory_space<vmem>>, vector<24x128xf32>
    tpu.vector_store %arg1[%c24_12, %c0_13], %20 {strides = array<i32>} : memref<168x128xf32, #tpu.memory_space<vmem>>, vector<24x128xf32>,
    %c320 = arith.constant 320 : index
    %c0_14 = arith.constant 0 : index
    %22 = vector.load %arg0[%c320, %c0_14] : memref<384x128xf32, #tpu.memory_space<vmem>>, vector<16x128xf32>
    %cst_15 = arith.constant dense<0.000000e+00> : vector<24x128xf32>
    %23 = tpu.matmul %16, %20, %cst_15 {dimension_numbers = #tpu.dot_dimension_numbers<[1], [0], [0], [1], [0, 0, 1, 1], [], []>} : vector<24x24xf32>, vector<24x128xf32>, vector<24x128xf32> -> vector<24x128xf32>
    %24 = vector.extract_strided_slice %23 {offsets = [0, 0], sizes = [24, 16], strides = [1, 1]} : vector<24x128xf32> to vector<24x16xf32>
    %cst_16 = arith.constant dense<0.000000e+00> : vector<24x128xf32>
    %25 = tpu.matmul %24, %22, %cst_16 {dimension_numbers = #tpu.dot_dimension_numbers<[1], [0], [0], [1], [0, 0, 1, 1], [], []>} : vector<24x16xf32>, vector<16x128xf32>, vector<24x128xf32> -> vector<24x128xf32>
    %cst_17 = arith.constant 0.000000e+00 : f32
    %26 = vector.broadcast %cst_17 : f32 to vector<24x128xf32>
    %27 = arith.maximumf %25, %26 : vector<24x128xf32>
    %c48 = arith.constant 48 : index
    %c0_18 = arith.constant 0 : index
    %28 = vector.load %arg1[%c48, %c0_18] : memref<168x128xf32, #tpu.memory_space<vmem>>, vector<24x128xf32>
    tpu.vector_store %arg1[%c48, %c0_18], %27 {strides = array<i32>} : memref<168x128xf32, #tpu.memory_space<vmem>>, vector<24x128xf32>,
    %c336 = arith.constant 336 : index
    %c0_19 = arith.constant 0 : index
    %29 = vector.load %arg0[%c336, %c0_19] : memref<384x128xf32, #tpu.memory_space<vmem>>, vector<16x128xf32>
    %cst_20 = arith.constant dense<0.000000e+00> : vector<24x128xf32>
    %30 = tpu.matmul %16, %27, %cst_20 {dimension_numbers = #tpu.dot_dimension_numbers<[1], [0], [0], [1], [0, 0, 1, 1], [], []>} : vector<24x24xf32>, vector<24x128xf32>, vector<24x128xf32> -> vector<24x128xf32>
    %31 = vector.extract_strided_slice %30 {offsets = [0, 0], sizes = [24, 16], strides = [1, 1]} : vector<24x128xf32> to vector<24x16xf32>
    %cst_21 = arith.constant dense<0.000000e+00> : vector<24x128xf32>
    %32 = tpu.matmul %31, %29, %cst_21 {dimension_numbers = #tpu.dot_dimension_numbers<[1], [0], [0], [1], [0, 0, 1, 1], [], []>} : vector<24x16xf32>, vector<16x128xf32>, vector<24x128xf32> -> vector<24x128xf32>
    %cst_22 = arith.constant 0.000000e+00 : f32
    %33 = vector.broadcast %cst_22 : f32 to vector<24x128xf32>
    %34 = arith.maximumf %32, %33 : vector<24x128xf32>
    %c72 = arith.constant 72 : index
    %c0_23 = arith.constant 0 : index
    %35 = vector.load %arg1[%c72, %c0_23] : memref<168x128xf32, #tpu.memory_space<vmem>>, vector<24x128xf32>
    tpu.vector_store %arg1[%c72, %c0_23], %34 {strides = array<i32>} : memref<168x128xf32, #tpu.memory_space<vmem>>, vector<24x128xf32>,
    %c352 = arith.constant 352 : index
    %c0_24 = arith.constant 0 : index
    %36 = vector.load %arg0[%c352, %c0_24] : memref<384x128xf32, #tpu.memory_space<vmem>>, vector<16x128xf32>
    %cst_25 = arith.constant dense<0.000000e+00> : vector<24x128xf32>
    %37 = tpu.matmul %16, %34, %cst_25 {dimension_numbers = #tpu.dot_dimension_numbers<[1], [0], [0], [1], [0, 0, 1, 1], [], []>} : vector<24x24xf32>, vector<24x128xf32>, vector<24x128xf32> -> vector<24x128xf32>
    %38 = vector.extract_strided_slice %37 {offsets = [0, 0], sizes = [24, 16], strides = [1, 1]} : vector<24x128xf32> to vector<24x16xf32>
    %cst_26 = arith.constant dense<0.000000e+00> : vector<24x128xf32>
    %39 = tpu.matmul %38, %36, %cst_26 {dimension_numbers = #tpu.dot_dimension_numbers<[1], [0], [0], [1], [0, 0, 1, 1], [], []>} : vector<24x16xf32>, vector<16x128xf32>, vector<24x128xf32> -> vector<24x128xf32>
    %cst_27 = arith.constant 0.000000e+00 : f32
    %40 = vector.broadcast %cst_27 : f32 to vector<24x128xf32>
    %41 = arith.maximumf %39, %40 : vector<24x128xf32>
    %c96 = arith.constant 96 : index
    %c0_28 = arith.constant 0 : index
    %42 = vector.load %arg1[%c96, %c0_28] : memref<168x128xf32, #tpu.memory_space<vmem>>, vector<24x128xf32>
    tpu.vector_store %arg1[%c96, %c0_28], %41 {strides = array<i32>} : memref<168x128xf32, #tpu.memory_space<vmem>>, vector<24x128xf32>,
    %c368 = arith.constant 368 : index
    %c0_29 = arith.constant 0 : index
    %43 = vector.load %arg0[%c368, %c0_29] : memref<384x128xf32, #tpu.memory_space<vmem>>, vector<16x128xf32>
    %cst_30 = arith.constant dense<0.000000e+00> : vector<24x128xf32>
    %44 = tpu.matmul %16, %41, %cst_30 {dimension_numbers = #tpu.dot_dimension_numbers<[1], [0], [0], [1], [0, 0, 1, 1], [], []>} : vector<24x24xf32>, vector<24x128xf32>, vector<24x128xf32> -> vector<24x128xf32>
    %45 = vector.extract_strided_slice %44 {offsets = [0, 0], sizes = [24, 16], strides = [1, 1]} : vector<24x128xf32> to vector<24x16xf32>
    %cst_31 = arith.constant dense<0.000000e+00> : vector<24x128xf32>
    %46 = tpu.matmul %45, %43, %cst_31 {dimension_numbers = #tpu.dot_dimension_numbers<[1], [0], [0], [1], [0, 0, 1, 1], [], []>} : vector<24x16xf32>, vector<16x128xf32>, vector<24x128xf32> -> vector<24x128xf32>
    %c120 = arith.constant 120 : index
    %c0_32 = arith.constant 0 : index
    %47 = vector.load %arg1[%c120, %c0_32] : memref<168x128xf32, #tpu.memory_space<vmem>>, vector<24x128xf32>
    tpu.vector_store %arg1[%c120, %c0_32], %46 {strides = array<i32>} : memref<168x128xf32, #tpu.memory_space<vmem>>, vector<24x128xf32>,
    %48 = vector.extract_strided_slice %46 {offsets = [0, 0], sizes = [24, 16], strides = [1, 1]} : vector<24x128xf32> to vector<24x16xf32>
    %cst_33 = arith.constant 0.000000e+00 : f32
    %49 = vector.broadcast %cst_33 : f32 to vector<128x16xf32>
    %c0_34 = arith.constant 0 : index
    %c0_35 = arith.constant 0 : index
    %50 = vector.load %arg2[%c0_34, %c0_35] : memref<128x16xf32, #tpu.memory_space<vmem>>, vector<128x16xf32>
    tpu.vector_store %arg2[%c0_34, %c0_35], %49 {strides = array<i32>} : memref<128x16xf32, #tpu.memory_space<vmem>>, vector<128x16xf32>,
    %c0_36 = arith.constant 0 : index
    %c0_37 = arith.constant 0 : index
    %51 = vector.load %arg2[%c0_36, %c0_37] : memref<128x16xf32, #tpu.memory_space<vmem>>, vector<24x16xf32>
    tpu.vector_store %arg2[%c0_36, %c0_37], %48 {strides = array<i32>} : memref<128x16xf32, #tpu.memory_space<vmem>>, vector<24x16xf32>,
    %c0_38 = arith.constant 0 : index
    %c0_39 = arith.constant 0 : index
    %52 = vector.load %arg2[%c0_38, %c0_39] : memref<128x16xf32, #tpu.memory_space<vmem>>, vector<128x16xf32>
    %cst_40 = arith.constant dense<0.000000e+00> : vector<24x128xf32>
    %53 = tpu.matmul %48, %52, %cst_40 {dimension_numbers = #tpu.dot_dimension_numbers<[1], [1], [0], [0], [0, 0, 1, 0], [], []>} : vector<24x16xf32>, vector<128x16xf32>, vector<24x128xf32> -> vector<24x128xf32>
    %54 = tpu.iota {dimensions = array<i32: 1>} : vector<24x128xi32>
    %c24_i32 = arith.constant 24 : i32
    %55 = vector.broadcast %c24_i32 : i32 to vector<24x128xi32>
    %56 = arith.cmpi slt, %54, %55 : vector<24x128xi32>
    %57 = arith.negf %53 : vector<24x128xf32>
    %58 = math.exp %57 : vector<24x128xf32>
    %cst_41 = arith.constant 1.000000e+00 : f32
    %59 = vector.broadcast %cst_41 : f32 to vector<24x128xf32>
    %60 = arith.addf %59, %58 : vector<24x128xf32>
    %61 = arith.divf %59, %60 : vector<24x128xf32>
    %cst_42 = arith.constant 0.000000e+00 : f32
    %62 = vector.broadcast %cst_42 : f32 to vector<24x128xf32>
    %63 = arith.select %56, %61, %62 : vector<24x128xi1>, vector<24x128xf32>
    %c144 = arith.constant 144 : index
    %c0_43 = arith.constant 0 : index
    %64 = vector.load %arg1[%c144, %c0_43] : memref<168x128xf32, #tpu.memory_space<vmem>>, vector<24x128xf32>
    tpu.vector_store %arg1[%c144, %c0_43], %63 {strides = array<i32>} : memref<168x128xf32, #tpu.memory_space<vmem>>, vector<24x128xf32>,
    return
  }
}

</mosaic_0001>

<bundles_post_ra>
// kernel: _forward_core.1
= control target key start
LH: loop header
LB: loop body
LE: loop exit
PB: predicated region body
PF: predicated region fallthrough
CT: control target
= control target key end

     0   :  { %v1982_v40 = vmov 0.0|0.0   ;;  %vm1983_vm0 = vmmov 0   ;;  %v1984_v41 = vmov 0.0   ;;  %vm297_vm1 = vcmask 195584   ;;  %s2428_s0 = inlined_call_operand.vmem [shape: f32[384,128], index: 0, kind: input, shape index: {}]   ;;  %s2429_s1 = inlined_call_operand.vmem [shape: f32[168,128], index: 1, kind: output, shape index: {}]  }
   0x1   :  { %v27_v0 = vld [vmem:[%s2428_s0 + $0x98] sm:$0xff]  ;;  %v28_v1 = vld [vmem:[%s2428_s0 + $0xa0] sm:$0xff]  ;;  %v29_v2 = vld [vmem:[%s2428_s0 + $0xa8] sm:$0xff]  ;;  %1899 = vmatprep.subr.bf16.mxu0 %v1982_v40  ;;  %1668 = vmatprep.mubr.msk.f32.mxu0 %vm1983_vm0, %v1984_v41  ;;  %vm387_vm2 = vcmask 130048  }
   0x2   :  { %v1843_v3 = vpack.c.bf16 %v28_v1, %v27_v0  ;;  %v30_v4 = vld [vmem:[%s2428_s0 + $0xb0] sm:$0xff]  ;;  %v31_v6 = vld [vmem:[%s2428_s0 + $0xb8] sm:$0xff]  ;;  %v32_v7 = vld [vmem:[%s2428_s0 + $0xc0] sm:$0xff]  ;;  %1185 = vst.msk [vmem:[#allocation2] sm:$0xff] %vm387_vm2, %v1984_v41 }
   0x3   :  { %v1847_v5 = vpack.c.bf16 %v30_v4, %v29_v2  ;;  %v1851_v8 = vpack.c.bf16 %v32_v7, %v31_v6  ;;  %v11_v9 = vld [vmem:[%s2428_s0 + $0x18] sm:$0xff]  ;;  %v33_v10 = vld [vmem:[%s2428_s0 + $0xc8] sm:$0xff]  ;;  %v34_v11 = vld [vmem:[%s2428_s0 + $0xd0] sm:$0xff]  ;;  %1186 = vst.msk [vmem:[#allocation2 + $0x8] sm:$0xff] %vm387_vm2, %v1984_v41 }
   0x4   :  { %1844 = vmatprep.subr.bf16.mxu1 %v1843_v3  ;;  %1597 = vmatprep.mubr.f32.mxu1 %v11_v9  ;;  %v1855_v12 = vpack.c.bf16 %v34_v11, %v33_v10  ;;  %v35_v13 = vld [vmem:[%s2428_s0 + $0xd8] sm:$0xff]  ;;  %v36_v14 = vld [vmem:[%s2428_s0 + $0xe0] sm:$0xff]  ;;  %v37_v16 = vld [vmem:[%s2428_s0 + $0xe8] sm:$0xff]  ;;  %1187 = vst.msk [vmem:[#allocation2 + $0x10] sm:$0xff] %vm387_vm2, %v1984_v41 }
   0x5   :  { %1846 = vmatpush3.bf16.msra.mxu1 %v1843_v3  ;;  %v1859_v15 = vpack.c.bf16 %v36_v14, %v35_v13  ;;  %v38_v17 = vld [vmem:[%s2428_s0 + $0xf0] sm:$0xff]  ;;  %v39_v19 = vld [vmem:[%s2428_s0 + $0xf8] sm:$0xff]  ;;  %v40_v20 = vld [vmem:[%s2428_s0 + $0x100] sm:$0xff]  ;;  %1188 = vst.msk [vmem:[#allocation2 + $0x18] sm:$0xff] %vm387_vm2, %v1984_v41 }
   0x6   :  { %1848 = vmatprep.subr.bf16.mxu1 %v1847_v5  ;;  %v1863_v18 = vpack.c.bf16 %v38_v17, %v37_v16  ;;  %v1867_v21 = vpack.c.bf16 %v40_v20, %v39_v19  ;;  %v41_v22 = vld [vmem:[%s2428_s0 + $0x108] sm:$0xff]  ;;  %v42_v23 = vld [vmem:[%s2428_s0 + $0x110] sm:$0xff]  ;;  %v12_v25 = vld [vmem:[%s2428_s0 + $0x20] sm:$0xff]  ;;  %1189 = vst.msk [vmem:[#allocation2 + $0x20] sm:$0xff] %vm387_vm2, %v1984_v41 }
   0x7   :  { %v1871_v24 = vpack.c.bf16 %v42_v23, %v41_v22  ;;  %v13_v26 = vld [vmem:[%s2428_s0 + $0x28] sm:$0xff]  ;;  %v14_v27 = vld [vmem:[%s2428_s0 + $0x30] sm:$0xff]  ;;  %v15_v28 = vld [vmem:[%s2428_s0 + $0x38] sm:$0xff]  ;;  %1190 = vst.msk [vmem:[#allocation2 + $0x28] sm:$0xff] %vm387_vm2, %v1984_v41 }
   0x8   :  { %v16_v29 = vld [vmem:[%s2428_s0 + $0x40] sm:$0xff]  ;;  %v17_v30 = vld [vmem:[%s2428_s0 + $0x48] sm:$0xff]  ;;  %v18_v31 = vld [vmem:[%s2428_s0 + $0x50] sm:$0xff]  ;;  %1191 = vst.msk [vmem:[#allocation2 + $0x30] sm:$0xff] %vm387_vm2, %v1984_v41 }
   0x9   :  { %1850 = vmatpush3.bf16.msra.mxu1 %v1847_v5  ;;  %v19_v32 = vld [vmem:[%s2428_s0 + $0x58] sm:$0xff]  ;;  %v20_v33 = vld [vmem:[%s2428_s0 + $0x60] sm:$0xff]  ;;  %v21_v34 = vld [vmem:[%s2428_s0 + $0x68] sm:$0xff]  ;;  %1192 = vst.msk [vmem:[#allocation2 + $0x38] sm:$0xff] %vm387_vm2, %v1984_v41 }
   0xa   :  { %1852 = vmatprep.subr.bf16.mxu1 %v1851_v8  ;;  %v22_v35 = vld [vmem:[%s2428_s0 + $0x70] sm:$0xff]  ;;  %v23_v36 = vld [vmem:[%s2428_s0 + $0x78] sm:$0xff]  ;;  %v24_v37 = vld [vmem:[%s2428_s0 + $0x80] sm:$0xff]  ;;  %1193 = vst.msk [vmem:[#allocation2 + $0x40] sm:$0xff] %vm387_vm2, %v1984_v41 }
   0xb   :  { %v25_v38 = vld [vmem:[%s2428_s0 + $0x88] sm:$0xff]  ;;  %v26_v39 = vld [vmem:[%s2428_s0 + $0x90] sm:$0xff]  ;;  %v2100_v42 = vld [vmem:[%s2428_s0 + $0x118] sm:$0xff]  ;;  %1194 = vst.msk [vmem:[#allocation2 + $0x48] sm:$0xff] %vm387_vm2, %v1984_v41 }
   0xc   :  { %v2105_v43 = vld [vmem:[%s2428_s0 + $0x128] sm:$0xff]  ;;  %274 = vadd.xlane.f32.xlu0 %v2100_v42  ;;  %v2112_v44 = vld [vmem:[%s2428_s0 + $0x120] sm:$0xff]  ;;  %v10_v7 = vld [vmem:[%s2428_s0 + $0x10] sm:$0xff]  ;;  %1195 = vst.msk [vmem:[#allocation2 + $0x50] sm:$0xff] %vm387_vm2, %v1984_v41 }
   0xd   :  { %1854 = vmatpush3.bf16.msra.mxu1 %v1851_v8  ;;  %278 = vadd.xlane.f32.xlu1 %v2105_v43  ;;  %v8_v5 = vld [vmem:[%s2428_s0] sm:$0xff]  ;;  %v9_v6 = vld [vmem:[%s2428_s0 + $0x8] sm:$0xff]  ;;  %v295_v8 = vld [vmem:[%s2428_s0 + $0x130] sm:$0xff]  ;;  %1196 = vst.msk [vmem:[#allocation2 + $0x58] sm:$0xff] %vm387_vm2, %v1984_v41 }
   0xe   :  { %1856 = vmatprep.subr.bf16.mxu1 %v1855_v12  ;;  %v296_v9 = vld [vmem:[%s2428_s0 + $0x138] sm:$0xff]  ;;  %1197 = vst.msk [vmem:[#allocation2 + $0x60] sm:$0xff] %vm387_vm2, %v1984_v41  ;;  %1198 = vst.msk [vmem:[#allocation2 + $0x68] sm:$0xff] %vm387_vm2, %v1984_v41 }
   0xf   :  { %v1903_v10 = vpack.c.bf16 %v296_v9, %v295_v8  ;;  %1199 = vst.msk [vmem:[#allocation2 + $0x70] sm:$0xff] %vm387_vm2, %v1984_v41  ;;  %1200 = vst.msk [vmem:[#allocation2 + $0x78] sm:$0xff] %vm387_vm2, %v1984_v41 }
  0x10   :  { %276 = vadd.xlane.f32.xlu0 %v2112_v44  ;;  %vm2385_vm3 = vmpackc.low %vm387_vm2, %vm387_vm2 }
  0x11   :  { %1858 = vmatpush3.bf16.msra.mxu1 %v1855_v12 }
  0x12   :  { %1860 = vmatprep.subr.bf16.mxu1 %v1859_v15 }
  0x15   :  { %1862 = vmatpush3.bf16.msra.mxu1 %v1859_v15 }
  0x16   :  { %1864 = vmatprep.subr.bf16.mxu1 %v1863_v18 }
  0x19   :  { %1866 = vmatpush3.bf16.msra.mxu1 %v1863_v18 }
  0x1a   :  { %1868 = vmatprep.subr.bf16.mxu1 %v1867_v21 }
  0x1d   :  { %1870 = vmatpush3.bf16.msra.mxu1 %v1867_v21 }
  0x1e   :  { %1872 = vmatprep.subr.bf16.mxu1 %v1871_v24 }
  0x21   :  { %1874 = vmatpush3.bf16.msra.mxu1 %v1871_v24 }
  0x22   :  { %1875 = vmatprep.subr.bf16.mxu1 %v1982_v40 }
  0x24   :  { %1598 = vmatmul.mubr.f32.vlgmr.msra.gmra.mrb[0].mxu1 %v12_v25 }
  0x25   :  { %1600 = vmatprep.mubr.f32.mxu1 %v13_v26 }
  0x28   :  { %1601 = vmatmul.mubr.f32.gmra.mrb[2].mxu1 %v14_v27 }
  0x29   :  { %1603 = vmatprep.mubr.f32.mxu1 %v15_v28 }
  0x2c   :  { %1604 = vmatmul.mubr.f32.gmra.mrb[4].mxu1 %v16_v29 }
  0x2d   :  { %1606 = vmatprep.mubr.f32.mxu1 %v17_v30 }
  0x30   :  { %1607 = vmatmul.mubr.f32.gmra.mrb[6].mxu1 %v18_v31 }
  0x31   :  { %1609 = vmatprep.mubr.f32.mxu1 %v19_v32 }
  0x34   :  { %1610 = vmatmul.mubr.f32.gmra.mrb[8].mxu1 %v20_v33 }
  0x35   :  { %1612 = vmatprep.mubr.f32.mxu1 %v21_v34 }
  0x38   :  { %1613 = vmatmul.mubr.f32.gmra.mrb[10].mxu1 %v22_v35 }
  0x39   :  { %1615 = vmatprep.mubr.f32.mxu1 %v23_v36 }
  0x3c   :  { %1616 = vmatmul.mubr.f32.gmra.mrb[12].mxu1 %v24_v37 }
  0x3d   :  { %1618 = vmatprep.mubr.f32.mxu1 %v25_v38 }
  0x40   :  { %1619 = vmatmul.mubr.f32.gmra.mrb[14].mxu1 %v26_v39 }
  0x41   :  { %1653 = vmatprep.mubr.msk.f32.mxu1 %vm1983_vm0, %v1984_v41 }
  0x99   :  { %v275_v11 = vpop.xlane.xlu0 %274 }
  0x9a   :  { %1964 = vrcp.f32 %v275_v11  ;;  %v279_v13 = vpop.xlane.xlu1 %278 }
  0x9d   :  { %v277_v12 = vpop.xlane.xlu0 %276 }
  0x9e   :  { %1966 = vrcp.f32 %v277_v12 }
  0x9f   :  { %1968 = vrcp.f32 %v279_v13 }
  0xa4   :  { %v1965_v14 = vpop.eup %1964 }
  0xa5   :  { %v283_v15 = vmul.f32 %v1965_v14, %v275_v11 }
  0xa7   :  { %v286_v19 = vsub.f32 2.0, %v283_v15  ;;  %v834_v15 = vld [vmem:[%s2428_s0 + $0x160] sm:$0xff] }
  0xa8   :  { %v1967_v16 = vpop.eup %1966 }
  0xa9   :  { %v284_v20 = vmul.f32 %v1967_v16, %v277_v12  ;;  %v1969_v21 = vpop.eup %1968  ;;  %v289_v25 = vmul.f32 %v1965_v14, %v286_v19 }
  0xaa   :  { %v285_v27 = vmul.f32 %v1969_v21, %v279_v13 }
  0xab   :  { %v287_v26 = vsub.f32 2.0, %v284_v20  ;;  %v2156_v30 = vmul.f32 %v289_v25, %v2100_v42 }
  0xac   :  { %v288_v32 = vsub.f32 2.0, %v285_v27 }
  0xad   :  { %v290_v31 = vmul.f32 %v1967_v16, %v287_v26  ;;  %v835_v16 = vld [vmem:[%s2428_s0 + $0x168] sm:$0xff] }
  0xae   :  { %v291_v34 = vmul.f32 %v1969_v21, %v288_v32 }
  0xaf   :  { %v2164_v33 = vmul.f32 %v290_v31, %v2112_v44  ;;  %v480_v44 = vld [vmem:[%s2428_s0 + $0x140] sm:$0xff] }
  0xb0   :  { %v2171_v35 = vmul.f32 %v291_v34, %v2105_v43 }
  0xf7   :  { %v1599_v45 = vpop.f32.mrb[0].mxu1 }
  0xf8   :  { %v112_v46 = vpop.f32.mrb[1].mxu1 }
  0xf9   :  { %v1876_v47 = vpack.c.bf16 %v1599_v45, %v112_v46  ;;  %v481_v45 = vld [vmem:[%s2428_s0 + $0x148] sm:$0xff] }
  0xfa   :  { %v1909_v46 = vpack.c.bf16 %v481_v45, %v480_v44 }
  0xfb   :  { %v1602_v48 = vpop.f32.mrb[2].mxu1  ;;  %1877 = vmatpush3.bf16.msra.mxu1 %v1876_v47 }
  0xfc   :  { %v122_v49 = vpop.f32.mrb[3].mxu1  ;;  %1878 = vmatprep.subr.bf16.mxu1 %v1982_v40 }
  0xfd   :  { %v1879_v50 = vpack.c.bf16 %v1602_v48, %v122_v49 }
  0xff   :  { %v1605_v51 = vpop.f32.mrb[4].mxu1  ;;  %1880 = vmatpush3.bf16.msra.mxu1 %v1879_v50 }
 0x100   :  { %v132_v52 = vpop.f32.mrb[5].mxu1  ;;  %1881 = vmatprep.subr.bf16.mxu1 %v1982_v40 }
 0x101   :  { %v1882_v53 = vpack.c.bf16 %v1605_v51, %v132_v52 }
 0x103   :  { %v1608_v54 = vpop.f32.mrb[6].mxu1  ;;  %1883 = vmatpush3.bf16.msra.mxu1 %v1882_v53 }
 0x104   :  { %v142_v55 = vpop.f32.mrb[7].mxu1  ;;  %1884 = vmatprep.subr.bf16.mxu1 %v1982_v40 }
 0x105   :  { %v1885_v56 = vpack.c.bf16 %v1608_v54, %v142_v55 }
 0x107   :  { %v1611_v57 = vpop.f32.mrb[8].mxu1  ;;  %1886 = vmatpush3.bf16.msra.mxu1 %v1885_v56 }
 0x108   :  { %v152_v58 = vpop.f32.mrb[9].mxu1  ;;  %1887 = vmatprep.subr.bf16.mxu1 %v1982_v40 }
 0x109   :  { %v1888_v59 = vpack.c.bf16 %v1611_v57, %v152_v58 }
 0x10b   :  { %v1614_v60 = vpop.f32.mrb[10].mxu1  ;;  %1889 = vmatpush3.bf16.msra.mxu1 %v1888_v59 }
 0x10c   :  { %v162_v61 = vpop.f32.mrb[11].mxu1  ;;  %1890 = vmatprep.subr.bf16.mxu1 %v1982_v40 }
 0x10d   :  { %v1891_v62 = vpack.c.bf16 %v1614_v60, %v162_v61  ;;  %v657_v60 = vld [vmem:[%s2428_s0 + $0x150] sm:$0xff]  ;;  %v658_v61 = vld [vmem:[%s2428_s0 + $0x158] sm:$0xff] }
 0x10f   :  { %v1617_v63 = vpop.f32.mrb[12].mxu1  ;;  %1892 = vmatpush3.bf16.msra.mxu1 %v1891_v62  ;;  %v1915_v62 = vpack.c.bf16 %v658_v61, %v657_v60 }
 0x110   :  { %v172_v0 = vpop.f32.mrb[13].mxu1  ;;  %1893 = vmatprep.subr.bf16.mxu1 %v1982_v40 }
 0x111   :  { %v1894_v1 = vpack.c.bf16 %v1617_v63, %v172_v0 }
 0x113   :  { %v1620_v2 = vpop.f32.mrb[14].mxu1  ;;  %1895 = vmatpush3.bf16.msra.mxu1 %v1894_v1 }
 0x114   :  { %v182_v3 = vpop.f32.mrb[15].mxu1  ;;  %1896 = vmatprep.subr.bf16.mxu1 %v1982_v40 }
 0x115   :  { %v1897_v4 = vpack.c.bf16 %v1620_v2, %v182_v3 }
 0x117   :  { %1898 = vmatpush3.bf16.msra.mxu1 %v1897_v4 }
 0x118   :  { %1902 = vmatprep.subr.bf16.mxu1 %v1982_v40 }
 0x11a   :  { %1654 = vmatmul.mubr.f32.vlgmr.msra.gmra.mrb[16].mxu1 %v8_v5 }
 0x11b   :  { %1656 = vmatprep.mubr.msk.f32.mxu1 %vm1983_vm0, %v1984_v41  ;;  %1904 = vmatpush3.bf16.msra.mxu1 %v1903_v10 }
 0x11c   :  { %1908 = vmatprep.subr.bf16.mxu1 %v1982_v40 }
 0x11e   :  { %1657 = vmatmul.mubr.f32.gmra.mrb[18].mxu1 %v9_v6 }
 0x11f   :  { %1659 = vmatprep.mubr.msk.f32.mxu1 %vm1983_vm0, %v1984_v41 }
 0x122   :  { %1660 = vmatmul.mubr.f32.gmra.mrb[20].mxu1 %v10_v7 }
 0x123   :  { %1681 = vmatprep.mubr.msk.f32.mxu1 %vm1983_vm0, %v1984_v41 }
 0x1ed   :  { %v257_v17 = vpop.f32.mrb[16].mxu1 }
 0x1ee   :  { %271 = vst [vmem:[%s2429_s1] sm:$0xff] %v257_v17  ;;  %v1655_v18 = vpop.f32.mrb[17].mxu1 }
 0x1f1   :  { %v262_v22 = vpop.f32.mrb[18].mxu1 }
 0x1f2   :  { %272 = vst [vmem:[%s2429_s1 + $0x8] sm:$0xff] %v262_v22  ;;  %v1658_v23 = vpop.f32.mrb[19].mxu1  ;;  %v1900_v24 = vpack.c.bf16 %v262_v22, %v257_v17  ;;  %v1921_v17 = vpack.c.bf16 %v835_v16, %v834_v15  ;;  %v1216_v16 = vld [vmem:[#allocation2 + $0x60] sm:$0xff] }
 0x1f4   :  { %1901 = vmatpush3.bf16.msra.mxu0 %v1900_v24 }
 0x1f5   :  { %v267_v28 = vpop.f32.mrb[20].mxu1  ;;  %1666 = vmatprep.subr.mxu0 %v1984_v41 }
 0x1f6   :  { %273 = vst [vmem:[%s2429_s1 + $0x10] sm:$0xff] %v267_v28  ;;  %v1661_v29 = vpop.f32.mrb[21].mxu1 }
 0x1f8   :  { %1667 = vmatpush3.msra.mxu0 %v267_v28 }
 0x1f9   :  { %1669 = vmatmul.mubr.msk.f32.vlgmr.msra.gmra.mrb[0].mxu0 %vm297_vm1, %v2156_v30  ;;  %1905 = vmatprep.subr.bf16.mxu0 %v1982_v40 }
 0x1fa   :  { %1671 = vmatprep.mubr.msk.f32.mxu0 %vm1983_vm0, %v1984_v41 }
 0x1fd   :  { %1672 = vmatmul.mubr.msk.f32.gmra.mrb[2].mxu0 %vm297_vm1, %v2164_v33 }
 0x1fe   :  { %1674 = vmatprep.mubr.msk.f32.mxu0 %vm1983_vm0, %v1984_v41 }
 0x201   :  { %1675 = vmatmul.mubr.msk.f32.gmra.mrb[4].mxu0 %vm297_vm1, %v2171_v35 }
 0x202   :  { %1696 = vmatprep.mubr.msk.f32.mxu0 %vm1983_vm0, %v1984_v41 }
 0x2cc   :  { %v373_v36 = vpop.f32.mrb[0].mxu0 }
 0x2cd   :  { %v1670_v37 = vpop.f32.mrb[1].mxu0  ;;  %1682 = vmatmul.mubr.msk.f32.vlgmr.msra.gmra.mrb[22].mxu1 %vm387_vm2, %v373_v36 }
 0x2ce   :  { %1684 = vmatprep.mubr.msk.f32.mxu1 %vm1983_vm0, %v1984_v41  ;;  %1910 = vmatpush3.bf16.msra.mxu1 %v1909_v46  ;;  %v1011_v37 = vld [vmem:[%s2428_s0 + $0x170] sm:$0xff] }
 0x2cf   :  { %1914 = vmatprep.subr.bf16.mxu1 %v1982_v40 }
 0x2d0   :  { %v378_v38 = vpop.f32.mrb[2].mxu0 }
 0x2d1   :  { %v1673_v39 = vpop.f32.mrb[3].mxu0  ;;  %1685 = vmatmul.mubr.msk.f32.gmra.mrb[24].mxu1 %vm387_vm2, %v378_v38  ;;  %v1012_v38 = vld [vmem:[%s2428_s0 + $0x178] sm:$0xff] }
 0x2d2   :  { %1687 = vmatprep.mubr.msk.f32.mxu1 %vm1983_vm0, %v1984_v41  ;;  %v1927_v39 = vpack.c.bf16 %v1012_v38, %v1011_v37 }
 0x2d4   :  { %v383_v42 = vpop.f32.mrb[4].mxu0 }
 0x2d5   :  { %v1676_v43 = vpop.f32.mrb[5].mxu0  ;;  %1688 = vmatmul.mubr.msk.f32.gmra.mrb[26].mxu1 %vm387_vm2, %v383_v42 }
 0x2d6   :  { %1709 = vmatprep.mubr.msk.f32.mxu1 %vm1983_vm0, %v1984_v41 }
 0x3a0   :  { %v463_v47 = vpop.f32.mrb[22].mxu1 }
 0x3a1   :  { %477 = vst [vmem:[%s2429_s1 + $0x18] sm:$0xff] %v463_v47  ;;  %v1683_v48 = vpop.f32.mrb[23].mxu1 }
 0x3a4   :  { %v468_v49 = vpop.f32.mrb[24].mxu1 }
 0x3a5   :  { %478 = vst [vmem:[%s2429_s1 + $0x20] sm:$0xff] %v468_v49  ;;  %v1906_v50 = vpack.c.bf16 %v468_v49, %v463_v47  ;;  %v1686_v51 = vpop.f32.mrb[25].mxu1 }
 0x3a7   :  { %1907 = vmatpush3.bf16.msra.mxu0 %v1906_v50 }
 0x3a8   :  { %v473_v52 = vpop.f32.mrb[26].mxu1  ;;  %1694 = vmatprep.subr.mxu0 %v1984_v41 }
 0x3a9   :  { %479 = vst [vmem:[%s2429_s1 + $0x28] sm:$0xff] %v473_v52  ;;  %v1689_v53 = vpop.f32.mrb[27].mxu1 }
 0x3ab   :  { %1695 = vmatpush3.msra.mxu0 %v473_v52 }
 0x3ac   :  { %1697 = vmatmul.mubr.msk.f32.vlgmr.msra.gmra.mrb[6].mxu0 %vm297_vm1, %v2156_v30  ;;  %1911 = vmatprep.subr.bf16.mxu0 %v1982_v40 }
 0x3ad   :  { %1699 = vmatprep.mubr.msk.f32.mxu0 %vm1983_vm0, %v1984_v41 }
 0x3b0   :  { %1700 = vmatmul.mubr.msk.f32.gmra.mrb[8].mxu0 %vm297_vm1, %v2164_v33 }
 0x3b1   :  { %1702 = vmatprep.mubr.msk.f32.mxu0 %vm1983_vm0, %v1984_v41 }
 0x3b4   :  { %1703 = vmatmul.mubr.msk.f32.gmra.mrb[10].mxu0 %vm297_vm1, %v2171_v35 }
 0x3b5   :  { %1724 = vmatprep.mubr.msk.f32.mxu0 %vm1983_vm0, %v1984_v41 }
 0x47f   :  { %v548_v54 = vpop.f32.mrb[6].mxu0 }
 0x480   :  { %v1698_v55 = vpop.f32.mrb[7].mxu0  ;;  %1710 = vmatmul.mubr.msk.f32.vlgmr.msra.gmra.mrb[28].mxu1 %vm387_vm2, %v548_v54 }
 0x481   :  { %1712 = vmatprep.mubr.msk.f32.mxu1 %vm1983_vm0, %v1984_v41  ;;  %1916 = vmatpush3.bf16.msra.mxu1 %v1915_v62 }
 0x482   :  { %1920 = vmatprep.subr.bf16.mxu1 %v1982_v40 }
 0x483   :  { %v553_v56 = vpop.f32.mrb[8].mxu0 }
 0x484   :  { %v1701_v57 = vpop.f32.mrb[9].mxu0  ;;  %1713 = vmatmul.mubr.msk.f32.gmra.mrb[30].mxu1 %vm387_vm2, %v553_v56 }
 0x485   :  { %1715 = vmatprep.mubr.msk.f32.mxu1 %vm1983_vm0, %v1984_v41 }
 0x487   :  { %v558_v58 = vpop.f32.mrb[10].mxu0 }
 0x488   :  { %v1704_v59 = vpop.f32.mrb[11].mxu0  ;;  %1716 = vmatmul.mubr.msk.f32.gmra.mrb[32].mxu1 %vm387_vm2, %v558_v58 }
 0x489   :  { %1737 = vmatprep.mubr.msk.f32.mxu1 %vm1983_vm0, %v1984_v41 }
 0x553   :  { %v637_v63 = vpop.f32.mrb[28].mxu1 }
 0x554   :  { %v651_v0 = vmax.f32 %v637_v63, 0.0  ;;  %v1711_v1 = vpop.f32.mrb[29].mxu1 }
 0x556   :  { %654 = vst [vmem:[%s2429_s1 + $0x30] sm:$0xff] %v651_v0 }
 0x557   :  { %v642_v2 = vpop.f32.mrb[30].mxu1 }
 0x558   :  { %v652_v3 = vmax.f32 %v642_v2, 0.0  ;;  %v1714_v4 = vpop.f32.mrb[31].mxu1  ;;  %v1207_v2 = vld [vmem:[#allocation2 + $0x18] sm:$0xff] }
 0x559   :  { %v1208_v4 = vld [vmem:[#allocation2 + $0x20] sm:$0xff] }
 0x55a   :  { %655 = vst [vmem:[%s2429_s1 + $0x38] sm:$0xff] %v652_v3  ;;  %v1912_v5 = vpack.c.bf16 %v652_v3, %v651_v0 }
 0x55b   :  { %v647_v6 = vpop.f32.mrb[32].mxu1 }
 0x55c   :  { %v653_v7 = vmax.f32 %v647_v6, 0.0  ;;  %v1717_v8 = vpop.f32.mrb[33].mxu1  ;;  %1913 = vmatpush3.bf16.msra.mxu0 %v1912_v5  ;;  %v1209_v5 = vld [vmem:[#allocation2 + $0x28] sm:$0xff] }
 0x55d   :  { %1722 = vmatprep.subr.mxu0 %v1984_v41  ;;  %v1938_v6 = vpack.c.bf16 %v1209_v5, %v1208_v4  ;;  %v1211_v8 = vld [vmem:[#allocation2 + $0x38] sm:$0xff] }
 0x55e   :  { %656 = vst [vmem:[%s2429_s1 + $0x40] sm:$0xff] %v653_v7 }
 0x560   :  { %1723 = vmatpush3.msra.mxu0 %v653_v7  ;;  %v1210_v7 = vld [vmem:[#allocation2 + $0x30] sm:$0xff] }
 0x561   :  { %1725 = vmatmul.mubr.msk.f32.vlgmr.msra.gmra.mrb[12].mxu0 %vm297_vm1, %v2156_v30  ;;  %1917 = vmatprep.subr.bf16.mxu0 %v1982_v40 }
 0x562   :  { %1727 = vmatprep.mubr.msk.f32.mxu0 %vm1983_vm0, %v1984_v41 }
 0x565   :  { %1728 = vmatmul.mubr.msk.f32.gmra.mrb[14].mxu0 %vm297_vm1, %v2164_v33 }
 0x566   :  { %1730 = vmatprep.mubr.msk.f32.mxu0 %vm1983_vm0, %v1984_v41 }
 0x569   :  { %1731 = vmatmul.mubr.msk.f32.gmra.mrb[16].mxu0 %vm297_vm1, %v2171_v35 }
 0x56a   :  { %1752 = vmatprep.mubr.msk.f32.mxu0 %vm1983_vm0, %v1984_v41 }
 0x634   :  { %v725_v9 = vpop.f32.mrb[12].mxu0 }
 0x635   :  { %v1726_v10 = vpop.f32.mrb[13].mxu0  ;;  %1738 = vmatmul.mubr.msk.f32.vlgmr.msra.gmra.mrb[34].mxu1 %vm387_vm2, %v725_v9  ;;  %v1942_v9 = vpack.c.bf16 %v1211_v8, %v1210_v7 }
 0x636   :  { %1740 = vmatprep.mubr.msk.f32.mxu1 %vm1983_vm0, %v1984_v41  ;;  %1922 = vmatpush3.bf16.msra.mxu1 %v1921_v17  ;;  %v1212_v10 = vld [vmem:[#allocation2 + $0x40] sm:$0xff]  ;;  %v1217_v17 = vld [vmem:[#allocation2 + $0x68] sm:$0xff] }
 0x637   :  { %1926 = vmatprep.subr.bf16.mxu1 %v1982_v40 }
 0x638   :  { %v730_v11 = vpop.f32.mrb[14].mxu0 }
 0x639   :  { %v1729_v12 = vpop.f32.mrb[15].mxu0  ;;  %1741 = vmatmul.mubr.msk.f32.gmra.mrb[36].mxu1 %vm387_vm2, %v730_v11  ;;  %v1213_v11 = vld [vmem:[#allocation2 + $0x48] sm:$0xff] }
 0x63a   :  { %1743 = vmatprep.mubr.msk.f32.mxu1 %vm1983_vm0, %v1984_v41  ;;  %v1946_v12 = vpack.c.bf16 %v1213_v11, %v1212_v10 }
 0x63c   :  { %v735_v13 = vpop.f32.mrb[16].mxu0 }
 0x63d   :  { %v1732_v14 = vpop.f32.mrb[17].mxu0  ;;  %1744 = vmatmul.mubr.msk.f32.gmra.mrb[38].mxu1 %vm387_vm2, %v735_v13  ;;  %v1214_v13 = vld [vmem:[#allocation2 + $0x50] sm:$0xff] }
 0x63e   :  { %1765 = vmatprep.mubr.msk.f32.mxu1 %vm1983_vm0, %v1984_v41  ;;  %v1215_v14 = vld [vmem:[#allocation2 + $0x58] sm:$0xff] }
 0x63f   :  { %v1950_v15 = vpack.c.bf16 %v1215_v14, %v1214_v13 }
 0x708   :  { %v814_v18 = vpop.f32.mrb[34].mxu1 }
 0x709   :  { %v828_v19 = vmax.f32 %v814_v18, 0.0  ;;  %v1739_v20 = vpop.f32.mrb[35].mxu1  ;;  %v1954_v18 = vpack.c.bf16 %v1217_v17, %v1216_v16 }
 0x70a   :  { %v1219_v20 = vld [vmem:[#allocation2 + $0x78] sm:$0xff] }
 0x70b   :  { %831 = vst [vmem:[%s2429_s1 + $0x48] sm:$0xff] %v828_v19 }
 0x70c   :  { %v819_v21 = vpop.f32.mrb[36].mxu1 }
 0x70d   :  { %v829_v22 = vmax.f32 %v819_v21, 0.0  ;;  %v1742_v23 = vpop.f32.mrb[37].mxu1 }
 0x70f   :  { %832 = vst [vmem:[%s2429_s1 + $0x50] sm:$0xff] %v829_v22  ;;  %v1918_v24 = vpack.c.bf16 %v829_v22, %v828_v19  ;;  %v1218_v19 = vld [vmem:[#allocation2 + $0x70] sm:$0xff] }
 0x710   :  { %v824_v25 = vpop.f32.mrb[38].mxu1  ;;  %v1958_v21 = vpack.c.bf16 %v1219_v20, %v1218_v19 }
 0x711   :  { %v830_v26 = vmax.f32 %v824_v25, 0.0  ;;  %v1745_v27 = vpop.f32.mrb[39].mxu1  ;;  %1919 = vmatpush3.bf16.msra.mxu0 %v1918_v24 }
 0x712   :  { %1750 = vmatprep.subr.mxu0 %v1984_v41 }
 0x713   :  { %833 = vst [vmem:[%s2429_s1 + $0x58] sm:$0xff] %v830_v26 }
 0x715   :  { %1751 = vmatpush3.msra.mxu0 %v830_v26 }
 0x716   :  { %1753 = vmatmul.mubr.msk.f32.vlgmr.msra.gmra.mrb[18].mxu0 %vm297_vm1, %v2156_v30  ;;  %1923 = vmatprep.subr.bf16.mxu0 %v1982_v40 }
 0x717   :  { %1755 = vmatprep.mubr.msk.f32.mxu0 %vm1983_vm0, %v1984_v41 }
 0x71a   :  { %1756 = vmatmul.mubr.msk.f32.gmra.mrb[20].mxu0 %vm297_vm1, %v2164_v33 }
 0x71b   :  { %1758 = vmatprep.mubr.msk.f32.mxu0 %vm1983_vm0, %v1984_v41 }
 0x71e   :  { %1759 = vmatmul.mubr.msk.f32.gmra.mrb[22].mxu0 %vm297_vm1, %v2171_v35 }
 0x71f   :  { %1780 = vmatprep.mubr.msk.f32.mxu0 %vm1983_vm0, %v1984_v41 }
 0x7e9   :  { %v902_v28 = vpop.f32.mrb[18].mxu0 }
 0x7ea   :  { %v1754_v29 = vpop.f32.mrb[19].mxu0  ;;  %1766 = vmatmul.mubr.msk.f32.vlgmr.msra.gmra.mrb[40].mxu1 %vm387_vm2, %v902_v28 }
 0x7eb   :  { %1768 = vmatprep.mubr.msk.f32.mxu1 %vm1983_vm0, %v1984_v41  ;;  %1928 = vmatpush3.bf16.msra.mxu1 %v1927_v39 }
 0x7ed   :  { %v907_v31 = vpop.f32.mrb[20].mxu0 }
 0x7ee   :  { %v1757_v32 = vpop.f32.mrb[21].mxu0  ;;  %1769 = vmatmul.mubr.msk.f32.gmra.mrb[42].mxu1 %vm387_vm2, %v907_v31 }
 0x7ef   :  { %1771 = vmatprep.mubr.msk.f32.mxu1 %vm1983_vm0, %v1984_v41 }
 0x7f1   :  { %v912_v34 = vpop.f32.mrb[22].mxu0 }
 0x7f2   :  { %v1760_v36 = vpop.f32.mrb[23].mxu0  ;;  %1772 = vmatmul.mubr.msk.f32.gmra.mrb[44].mxu1 %vm387_vm2, %v912_v34  ;;  %v1357_v34 = vlaneseq }
 0x7f3   :  { %1793 = vmatprep.mubr.msk.f32.mxu1 %vm1983_vm0, %v1984_v41 }
 0x7f4   :  { %v1358_v37 = vand.u32 127, %v1357_v34 }
 0x7f6   :  { %vm1359_vm4 = vcmp.lt.s32.totalorder %v1358_v37, 24 }
 0x8bd   :  { %v991_v42 = vpop.f32.mrb[40].mxu1 }
 0x8be   :  { %v1005_v43 = vmax.f32 %v991_v42, 0.0  ;;  %v1767_v44 = vpop.f32.mrb[41].mxu1 }
 0x8c0   :  { %1008 = vst [vmem:[%s2429_s1 + $0x60] sm:$0xff] %v1005_v43 }
 0x8c1   :  { %v996_v45 = vpop.f32.mrb[42].mxu1 }
 0x8c2   :  { %v1006_v46 = vmax.f32 %v996_v45, 0.0  ;;  %v1770_v47 = vpop.f32.mrb[43].mxu1 }
 0x8c4   :  { %1009 = vst [vmem:[%s2429_s1 + $0x68] sm:$0xff] %v1006_v46  ;;  %v1924_v48 = vpack.c.bf16 %v1006_v46, %v1005_v43 }
 0x8c5   :  { %v1001_v49 = vpop.f32.mrb[44].mxu1 }
 0x8c6   :  { %v1007_v50 = vmax.f32 %v1001_v49, 0.0  ;;  %v1773_v51 = vpop.f32.mrb[45].mxu1  ;;  %1925 = vmatpush3.bf16.msra.mxu0 %v1924_v48 }
 0x8c7   :  { %1778 = vmatprep.subr.mxu0 %v1984_v41 }
 0x8c8   :  { %1010 = vst [vmem:[%s2429_s1 + $0x70] sm:$0xff] %v1007_v50 }
 0x8ca   :  { %1779 = vmatpush3.msra.mxu0 %v1007_v50 }
 0x8cb   :  { %1781 = vmatmul.mubr.msk.f32.vlgmr.msra.gmra.mrb[24].mxu0 %vm297_vm1, %v2156_v30  ;;  %1929 = vmatprep.subr.bf16.mxu0 %v1982_v40 }
 0x8cc   :  { %1783 = vmatprep.mubr.msk.f32.mxu0 %vm1983_vm0, %v1984_v41 }
 0x8cf   :  { %1784 = vmatmul.mubr.msk.f32.gmra.mrb[26].mxu0 %vm297_vm1, %v2164_v33 }
 0x8d0   :  { %1786 = vmatprep.mubr.msk.f32.mxu0 %vm1983_vm0, %v1984_v41 }
 0x8d3   :  { %1787 = vmatmul.mubr.msk.f32.gmra.mrb[28].mxu0 %vm297_vm1, %v2171_v35 }
 0x8d4   :  { %1834 = vmatprep.mubr.msk.f32.mxu0 %vm1983_vm0, %v1984_v41 }
 0x99e   :  { %v1079_v52 = vpop.f32.mrb[24].mxu0 }
 0x99f   :  { %v1782_v53 = vpop.f32.mrb[25].mxu0  ;;  %1794 = vmatmul.mubr.msk.f32.vlgmr.msra.gmra.mrb[46].mxu1 %vm387_vm2, %v1079_v52 }
 0x9a0   :  { %1796 = vmatprep.mubr.msk.f32.mxu1 %vm1983_vm0, %v1984_v41 }
 0x9a2   :  { %v1084_v30 = vpop.f32.mrb[26].mxu0 }
 0x9a3   :  { %v1785_v54 = vpop.f32.mrb[27].mxu0  ;;  %1797 = vmatmul.mubr.msk.f32.gmra.mrb[48].mxu1 %vm387_vm2, %v1084_v30 }
 0x9a4   :  { %1799 = vmatprep.mubr.msk.f32.mxu1 %vm1983_vm0, %v1984_v41 }
 0x9a6   :  { %v1089_v33 = vpop.f32.mrb[28].mxu0 }
 0x9a7   :  { %v1788_v55 = vpop.f32.mrb[29].mxu0  ;;  %1800 = vmatmul.mubr.msk.f32.gmra.mrb[50].mxu1 %vm387_vm2, %v1089_v33 }
 0xa72   :  { %v1168_v35 = vpop.f32.mrb[46].mxu1 }
 0xa73   :  { %1182 = vst [vmem:[%s2429_s1 + $0x78] sm:$0xff] %v1168_v35  ;;  %1201 = vst.msk [vmem:[#allocation2] sm:$0xff] %vm387_vm2, %v1168_v35  ;;  %v1795_v56 = vpop.f32.mrb[47].mxu1 }
 0xa76   :  { %v1173_v57 = vpop.f32.mrb[48].mxu1 }
 0xa77   :  { %1183 = vst [vmem:[%s2429_s1 + $0x80] sm:$0xff] %v1173_v57  ;;  %1202 = vst.msk [vmem:[#allocation2 + $0x8] sm:$0xff] %vm387_vm2, %v1173_v57  ;;  %v1798_v58 = vpop.f32.mrb[49].mxu1 }
 0xa7a   :  { %v1178_v59 = vpop.f32.mrb[50].mxu1  ;;  %v1204_v61 = vld [vmem:[#allocation2] sm:$0xff] }
 0xa7b   :  { %1184 = vst [vmem:[%s2429_s1 + $0x88] sm:$0xff] %v1178_v59  ;;  %1203 = vst.msk [vmem:[#allocation2 + $0x10] sm:$0xff] %vm387_vm2, %v1178_v59  ;;  %v1801_v60 = vpop.f32.mrb[51].mxu1 }
 0xa7e   :  { %v1205_v62 = vld [vmem:[#allocation2 + $0x8] sm:$0xff] }
 0xa7f   :  { %v1930_v0 = vpack.c.bf16 %v1205_v62, %v1204_v61 }
 0xa81   :  { %1932 = vmatpush3.bf16.xpose.msk.msra.mxu0 %vm2385_vm3, %v1930_v0 }
 0xa82   :  { %1933 = vmatprep.subr.bf16.mxu0 %v1982_v40  ;;  %v1206_v1 = vld [vmem:[#allocation2 + $0x10] sm:$0xff] }
 0xa83   :  { %v1934_v3 = vpack.c.bf16 %v1207_v2, %v1206_v1 }
 0xa89   :  { %1936 = vmatpush3.bf16.xpose.msk.msra.mxu0 %vm2385_vm3, %v1934_v3 }
 0xa8a   :  { %1937 = vmatprep.subr.bf16.mxu0 %v1982_v40 }
 0xa91   :  { %1940 = vmatpush3.bf16.xpose.msk.msra.mxu0 %vm2385_vm3, %v1938_v6 }
 0xa92   :  { %1941 = vmatprep.subr.bf16.mxu0 %v1982_v40 }
 0xa99   :  { %1944 = vmatpush3.bf16.xpose.msk.msra.mxu0 %vm2385_vm3, %v1942_v9 }
 0xa9a   :  { %1945 = vmatprep.subr.bf16.mxu0 %v1982_v40 }
 0xaa1   :  { %1948 = vmatpush3.bf16.xpose.msk.msra.mxu0 %vm2385_vm3, %v1946_v12 }
 0xaa2   :  { %1949 = vmatprep.subr.bf16.mxu0 %v1982_v40 }
 0xaa9   :  { %1952 = vmatpush3.bf16.xpose.msk.msra.mxu0 %vm2385_vm3, %v1950_v15 }
 0xaaa   :  { %1953 = vmatprep.subr.bf16.mxu0 %v1982_v40 }
 0xab1   :  { %1956 = vmatpush3.bf16.xpose.msk.msra.mxu0 %vm2385_vm3, %v1954_v18 }
 0xab2   :  { %1957 = vmatprep.subr.bf16.mxu0 %v1982_v40 }
 0xab9   :  { %1960 = vmatpush3.bf16.xpose.msk.msra.mxu0 %vm2385_vm3, %v1958_v21 }
 0xac0   :  { %1835 = vmatmul.mubr.msk.f32.vlgmr.msra.gmra.mrb[30].mxu0 %vm387_vm2, %v1168_v35 }
 0xac1   :  { %1837 = vmatprep.mubr.msk.f32.mxu0 %vm1983_vm0, %v1984_v41 }
 0xac4   :  { %1838 = vmatmul.mubr.msk.f32.gmra.mrb[32].mxu0 %vm387_vm2, %v1173_v57 }
 0xac5   :  { %1840 = vmatprep.mubr.msk.f32.mxu0 %vm1983_vm0, %v1984_v41 }
 0xac8   :  { %1841 = vmatmul.mubr.msk.f32.gmra.mrb[34].mxu0 %vm387_vm2, %v1178_v59 }
 0xb93   :  { %v1343_v22 = vpop.f32.mrb[30].mxu0 }
 0xb94   :  { %v1437_v40 = vmul.f32 -1.442695, %v1343_v22  ;;  %v1836_v23 = vpop.f32.mrb[31].mxu0 }
 0xb96   :  { %1970 = vpow2.f32 %v1437_v40 }
 0xb97   :  { %v1348_v24 = vpop.f32.mrb[32].mxu0 }
 0xb98   :  { %v1438_v25 = vmul.f32 -1.442695, %v1348_v24  ;;  %v1839_v26 = vpop.f32.mrb[33].mxu0 }
 0xb9a   :  { %1972 = vpow2.f32 %v1438_v25 }
 0xb9b   :  { %v1353_v27 = vpop.f32.mrb[34].mxu0 }
 0xb9c   :  { %v1439_v28 = vmul.f32 -1.442695, %v1353_v27  ;;  %v1842_v29 = vpop.f32.mrb[35].mxu0 }
 0xb9e   :  { %1974 = vpow2.f32 %v1439_v28 }
 0xba0   :  { %v1971_v31 = vpop.eup %1970 }
 0xba1   :  { %v1369_v32 = vadd.f32 1.0, %v1971_v31 }
 0xba3   :  { %1976 = vrcp.f32 %v1369_v32 }
 0xba4   :  { %v1973_v36 = vpop.eup %1972 }
 0xba5   :  { %v1370_v41 = vadd.f32 1.0, %v1973_v36 }
 0xba7   :  { %1978 = vrcp.f32 %v1370_v41 }
 0xba8   :  { %v1975_v38 = vpop.eup %1974 }
 0xba9   :  { %v1371_v39 = vadd.f32 1.0, %v1975_v38 }
 0xbab   :  { %1980 = vrcp.f32 %v1371_v39 }
 0xbad   :  { %v1977_v42 = vpop.eup %1976 }
 0xbae   :  { %v1378_v43 = vsel %vm1359_vm4, %v1977_v42, 0.0 }
 0xbaf   :  { %1381 = vst [vmem:[%s2429_s1 + $0x90] sm:$0xff] %v1378_v43 }
 0xbb1   :  { %v1979_v44 = vpop.eup %1978 }
 0xbb2   :  { %v1379_v45 = vsel %vm1359_vm4, %v1979_v44, 0.0 }
 0xbb3   :  { %1382 = vst [vmem:[%s2429_s1 + $0x98] sm:$0xff] %v1379_v45 }
 0xbb5   :  { %v1981_v46 = vpop.eup %1980 }
 0xbb6   :  { %v1380_v47 = vsel %vm1359_vm4, %v1981_v46, 0.0 }
 0xbb7   :  { %1383 = vst [vmem:[%s2429_s1 + $0xa0] sm:$0xff] %v1380_v47 }

</bundles_post_ra>
